<compile_context>
chip_gen: v7x
topology: tpu7x:2x2x1
jax: 0.10.0
libtpu: 0.0.40
codegen_flags: <defaults>
</compile_context>

<pallas_src>
import jax
import jax.numpy as jnp
from jax import lax
from jax.experimental import pallas as pl
from jax.experimental.pallas import tpu as pltpu


def _linear_edge_kernel(x_ref, w_ref, o_ref):
    # x_ref: (row_tile, H)   VMEM tile of flattened edge embeddings
    # w_ref: (out_dim, H)    full weight in native nn.Linear layout (resident)
    # o_ref: (row_tile, out_dim)
    acc = lax.dot_general(
        x_ref[...], w_ref[...],
        dimension_numbers=(((1,), (1,)), ((), ())),  # contract H with H
        preferred_element_type=jnp.float32,
    )
    o_ref[...] = acc.astype(o_ref.dtype)


def _pick_row_tile(rows, hidden_dim, out_dim, itemsize,
                   vmem_budget_bytes=24 * 1024 * 1024, max_tile=1024):
    """Largest row tile (multiple of 8, <= max_tile) whose double-buffered
    footprint fits the VMEM budget; valid on v5e/v6e (128 MiB phys) and
    v7x (64 MiB phys) since the budget stays <= 24 MiB."""
    weight_bytes = 2 * hidden_dim * out_dim * itemsize      # counted twice, conservative
    per_row = 2 * (hidden_dim + out_dim) * itemsize         # 2x in-buf + 2x out-buf
    by_vmem = max(8, (vmem_budget_bytes - weight_bytes) // per_row)
    tile = min(max_tile, by_vmem, max(rows, 8))
    tile = max(8, (tile // 8) * 8)                          # sublane-aligned
    return int(tile)


def linear_edge_decoder(e, weight):
    """Pallas forward of LinearEdgeDecoder.

    e:      (B, n_edges, hidden_dim)
    weight: (edge_out_dim, hidden_dim)  -- native nn.Linear layout
    returns (logits of shape (B, n_edges, edge_out_dim), None)
    """
    B, E, H = e.shape
    out_dim = weight.shape[0]
    rows = B * E
    itemsize = jnp.dtype(e.dtype).itemsize

    row_tile = _pick_row_tile(rows, H, out_dim, itemsize)
    grid = pl.cdiv(rows, row_tile)

    x2d = e.reshape(rows, H)

    cost = pl.CostEstimate(
        flops=2 * rows * H * out_dim,
        transcendentals=0,
        bytes_accessed=itemsize * (rows * H + H * out_dim + rows * out_dim),
    )

    out2d = pl.pallas_call(
        _linear_edge_kernel,
        out_shape=jax.ShapeDtypeStruct((rows, out_dim), e.dtype),
        grid_spec=pltpu.PrefetchScalarGridSpec(
            num_scalar_prefetch=0,
            grid=(grid,),
            in_specs=[
                pl.BlockSpec((row_tile, H), lambda i: (i, 0)),
                pl.BlockSpec((out_dim, H), lambda i: (0, 0)),  # resident weight
            ],
            out_specs=pl.BlockSpec((row_tile, out_dim), lambda i: (i, 0)),
        ),
        compiler_params=pltpu.CompilerParams(
            dimension_semantics=("parallel",),   # row axis -> megacore split on v7x
            vmem_limit_bytes=32 * 1024 * 1024,
        ),
        cost_estimate=cost,
    )(x2d, weight)

    # Module returns a tuple: (logits, None)
    return out2d.reshape(B, E, out_dim), None


linear_edge_decoder_jit = jax.jit(linear_edge_decoder)


if __name__ == "__main__":
    # Small shapes consistent with the module's forward.
    batch, n_edges, hidden_dim, edge_out_dim = 2, 16, 32, 8

    key = jax.random.PRNGKey(0)
    k_e, k_w = jax.random.split(key)

    e = jax.random.normal(k_e, (batch, n_edges, hidden_dim), dtype=jnp.float32)

    # Deterministic parameter init matching nn.Linear(hidden_dim, edge_out_dim, bias=False):
    # weight shape (edge_out_dim, hidden_dim), uniform(-1/sqrt(H), 1/sqrt(H)).
    bound = 1.0 / jnp.sqrt(jnp.float32(hidden_dim))
    weight = jax.random.uniform(
        k_w, (edge_out_dim, hidden_dim), dtype=jnp.float32,
        minval=-bound, maxval=bound,
    )

    out, aux = linear_edge_decoder_jit(e, weight)
    jax.block_until_ready(out)

    # Reference check in plain JAX.
    ref = jnp.einsum("beh,oh->beo", e, weight)
    assert out.shape == (batch, n_edges, edge_out_dim)
    assert aux is None
    assert jnp.allclose(out, ref, atol=1e-5, rtol=1e-5)

    # Also exercise the ragged path (rows not a multiple of the row tile /
    # not a multiple of 8), relying on Pallas partial-block boundary handling.
    e_odd = jax.random.normal(k_e, (batch, 13, hidden_dim), dtype=jnp.float32)
    out_odd, _ = linear_edge_decoder_jit(e_odd, weight)
    jax.block_until_ready(out_odd)
    ref_odd = jnp.einsum("beh,oh->beo", e_odd, weight)
    assert out_odd.shape == (batch, 13, edge_out_dim)
    assert jnp.allclose(out_odd, ref_odd, atol=1e-5, rtol=1e-5)

    print("KERNEL_OK")
</pallas_src>

<mosaic_0001>
module attributes {stable_mosaic.version = 11 : i64} {
  func.func @_linear_edge_kernel(%arg0: i32, %arg1: memref<32x32xf32, #tpu.memory_space<vmem>>, %arg2: memref<8x32xf32, #tpu.memory_space<vmem>>, %arg3: memref<32x8xf32, #tpu.memory_space<vmem>>) attributes {dimension_semantics = [#tpu.dimension_semantics<parallel>], iteration_bounds = array<i64: 1>, scalar_prefetch = 0 : i64, scratch_operands = 0 : i64, tpu.core_type = #tpu.core_type<tc>, window_params = [{transform_indices = @transform_0, window_bounds = array<i64: 32, 32>}, {pipeline_mode = #tpu.pipeline_mode<synchronous>, transform_indices = @transform_1, window_bounds = array<i64: 8, 32>}, {transform_indices = @transform_2, window_bounds = array<i64: 32, 8>}]} {
    %c0 = arith.constant 0 : index
    %c0_0 = arith.constant 0 : index
    %0 = vector.load %arg1[%c0, %c0_0] : memref<32x32xf32, #tpu.memory_space<vmem>>, vector<32x32xf32>
    %c0_1 = arith.constant 0 : index
    %c0_2 = arith.constant 0 : index
    %1 = vector.load %arg2[%c0_1, %c0_2] : memref<8x32xf32, #tpu.memory_space<vmem>>, vector<8x32xf32>
    %cst = arith.constant dense<0.000000e+00> : vector<32x8xf32>
    %2 = tpu.matmul %0, %1, %cst {dimension_numbers = #tpu.dot_dimension_numbers<[1], [1], [0], [0], [0, 0, 1, 0], [], []>} : vector<32x32xf32>, vector<8x32xf32>, vector<32x8xf32> -> vector<32x8xf32>
    %c0_3 = arith.constant 0 : index
    %c0_4 = arith.constant 0 : index
    %3 = vector.load %arg3[%c0_3, %c0_4] : memref<32x8xf32, #tpu.memory_space<vmem>>, vector<32x8xf32>
    tpu.vector_store %arg3[%c0_3, %c0_4], %2 {strides = array<i32>} : memref<32x8xf32, #tpu.memory_space<vmem>>, vector<32x8xf32>,
    return
  }
  func.func @transform_0(%arg0: i32) -> (i32, i32) {
    %c0_i32 = arith.constant 0 : i32
    %c0_i32_0 = arith.constant 0 : i32
    return %arg0, %c0_i32 : i32, i32
  }
  func.func @transform_1(%arg0: i32) -> (i32, i32) {
    %c0_i32 = arith.constant 0 : i32
    %c0_i32_0 = arith.constant 0 : i32
    %c0_i32_1 = arith.constant 0 : i32
    return %c0_i32, %c0_i32_0 : i32, i32
  }
  func.func @transform_2(%arg0: i32) -> (i32, i32) {
    %c0_i32 = arith.constant 0 : i32
    %c0_i32_0 = arith.constant 0 : i32
    return %arg0, %c0_i32 : i32, i32
  }
}

</mosaic_0001>

<bundles_post_ra>
// kernel: linear_edge_decoder.1
= control target key start
LH: loop header
LB: loop body
LE: loop exit
PB: predicated region body
PF: predicated region fallthrough
CT: control target
= control target key end

     0   :  { %7 = vsyncpa [#allocation3], 0  ;;  %s281_s0 = inlined_call_operand.hbm [shape: f32[32,32], index: 0, kind: input, shape index: {}]   ;;  %s282_s1 = inlined_call_operand.hbm [shape: f32[8,32], index: 1, kind: input, shape index: {}]   ;;  %s283_s2 = inlined_call_operand.vmem [shape: f32[32,8], index: 2, kind: output, shape index: {}]  }
   0x1   :  { %8 = vsyncpa [#allocation5], 0  ;;  %s226_s9 = smov [#allocation2]   ;;  %s178_s13 = scalar_lea.hbm %s281_s0, 512 }
   0x2   :  { %s14_s10 = sshll.u32 %s226_s9, 4  ;;  %p179_p0 = scmp.ne.s32.totalorder %s281_s0, %s178_s13  ;;  %s15_s10 = int_to_ptr.vmem [resolvable:$true] %s14_s10 }
   0x3   :  { %p182_p1 = scmp.lt.u32.totalorder %s178_s13, %s281_s0 }
   0x5   :  { %p184_p2 = pnand %p182_p1, %p179_p0 }
   0x7   :  { %187 = shalt.err (!%p184_p2)
}
   0x8   :  { %s188_s18 = scalar_lea.vmem %s15_s10, 512  ;;  %p193_p4 = scmp.lt.s32.totalorder %s15_s10, %s15_s10 }
   0x9   :  { %p189_p3 = scmp.ne.s32.totalorder %s15_s10, %s188_s18  ;;  %p194_p5 = scmp.lt.s32.totalorder %s188_s18, %s188_s18 }
   0xb   :  { %p195_p6 = por %p194_p5, %p193_p4 }
   0xd   :  { %p196_p7 = pnand %p195_p6, %p189_p3 }
   0xf   :  { %199 = shalt.err (!%p196_p7)
}
  0x10   :  { %s227_s19 = smov 128   ;;  %s228_s20 = smov 8  }
  0x11   :  { %20 = dma.hbm_to_vmem [thread:$0]  %s281_s0, 512, %s15_s10, [#allocation3], %s227_s19, %s227_s19, %s228_s20  }
  0x12   :  { %s229_s23 = smov [#allocation4]   ;;  %s200_s27 = scalar_lea.hbm %s282_s1, 128 }
  0x13   :  { %s27_s24 = sshll.u32 %s229_s23, 4  ;;  %p201_p8 = scmp.ne.s32.totalorder %s282_s1, %s200_s27  ;;  %s28_s24 = int_to_ptr.vmem [resolvable:$true] %s27_s24 }
  0x14   :  { %p204_p9 = scmp.lt.u32.totalorder %s200_s27, %s282_s1 }
  0x16   :  { %p206_p10 = pnand %p204_p9, %p201_p8 }
  0x18   :  { %209 = shalt.err (!%p206_p10)
}
  0x19   :  { %s210_s4 = scalar_lea.vmem %s28_s24, 128  ;;  %p215_p12 = scmp.lt.s32.totalorder %s28_s24, %s28_s24 }
  0x1a   :  { %p211_p11 = scmp.ne.s32.totalorder %s28_s24, %s210_s4  ;;  %p216_p13 = scmp.lt.s32.totalorder %s210_s4, %s210_s4 }
  0x1c   :  { %p217_p0 = por %p216_p13, %p215_p12 }
  0x1e   :  { %p218_p1 = pnand %p217_p0, %p211_p11 }
  0x20   :  { %221 = shalt.err (!%p218_p1)
}
  0x21   :  { %30 = dma.hbm_to_vmem [thread:$0]  %s282_s1, 128, %s28_s24, [#allocation5]  }
  0x22   :  { %222 = dma.done.wait [#allocation3], 512  }
  0x23   :  { %223 = vsyncadd [#allocation3], 4294966784 }
  0x24   :  { %224 = dma.done.wait [#allocation5], 128  }
  0x25   :  { %225 = vsyncadd [#allocation5], 4294967168  ;;  %vm42_vm0 = vcmask 261120   ;;  %v41_v0 = vld [vmem:[#allocation4] sm:$0xff]  ;;  %v39_v2 = vld [vmem:[#allocation2 + $0x10] sm:$0xff]  ;;  %vm143_vm1 = vcmask 64512  }
  0x26   :  { %v37_v1 = vld [vmem:[#allocation2] sm:$0xff]  ;;  %164 = vmatprep.subr.msk.mxu0 %vm42_vm0, %v41_v0  ;;  %172 = vmatprep.subr.msk.mxu1 %vm42_vm0, %v41_v0  ;;  %v38_v3 = vld [vmem:[#allocation2 + $0x8] sm:$0xff]  ;;  %v40_v4 = vld [vmem:[#allocation2 + $0x18] sm:$0xff] }
  0x27   :  { %165 = vmatpush3.xpose.msk.msra.mxu0 %vm42_vm0, %v41_v0  ;;  %173 = vmatpush3.xpose.msk.msra.mxu1 %vm42_vm0, %v41_v0 }
  0x28   :  { %166 = vmatprep.mubr.msk.f32.mxu0 %vm42_vm0, %v37_v1  ;;  %169 = vmatprep.mubr.msk.f32.mxu1 %vm42_vm0, %v39_v2 }
  0x2a   :  { %167 = vmatmul.mubr.msk.f32.vlgmr.msra.gmra.mrb[0].mxu0 %vm42_vm0, %v38_v3  ;;  %170 = vmatmul.mubr.msk.f32.vlgmr.msra.gmra.mrb[0].mxu1 %vm42_vm0, %v40_v4 }
  0xfd   :  { %v168_v5 = vpop.f32.mrb[0].mxu0  ;;  %v171_v6 = vpop.f32.mrb[0].mxu1 }
  0xfe   :  { %145 = vst.msk [vmem:[%s283_s2 + $0x8] sm:$0xff] %vm143_vm1, %v168_v5  ;;  %147 = vst.msk [vmem:[%s283_s2 + $0x18] sm:$0xff] %vm143_vm1, %v171_v6  ;;  %v124_v7 = vpop.f32.mrb[1].mxu0  ;;  %v134_v8 = vpop.f32.mrb[1].mxu1 }
  0xff   :  { %144 = vst.msk [vmem:[%s283_s2] sm:$0xff] %vm143_vm1, %v124_v7  ;;  %146 = vst.msk [vmem:[%s283_s2 + $0x10] sm:$0xff] %vm143_vm1, %v134_v8 }
 0x100   :  { %152 = vsyncpa [#allocation3], 1 }
 0x101   :  { %153 = vsyncpa [#allocation5], 1 }

</bundles_post_ra>
